<compile_context>
chip_gen: v7x
topology: tpu7x:2x2x1
jax: 0.10.0
libtpu: 0.0.40
codegen_flags: <defaults>
</compile_context>

<pallas_src>
import numpy as np
import jax
import jax.numpy as jnp
from jax import lax
from jax.experimental import pallas as pl
from jax.experimental.pallas import tpu as pltpu


# --------------------------- fused per-batch kernel --------------------------
def _fused_kernel(x_ref, adj_ref, wt_ref, b_ref, fcw_ref, s_ref, q_ref, fcb_ref,
                  feat_ref, adj_out_ref):
    # x_ref  : (1, N, F)      adj_ref: (1, N, N)
    # wt_ref : (3, M, N)      block-diagonal conv1d tap weights (k = 0,1,2)
    # b_ref  : (M, 1)         conv1d bias, tiled over leads
    # fcw_ref: (1, F)         AdaptiveWeight fc weight row
    # s_ref  : (2, F, F)      feature shift matrices (f-1 / f+1, zero-padded)
    # q_ref  : (M, N)         block-diagonal adjacency pooling matrix
    # fcb_ref: (1, 1) in SMEM AdaptiveWeight fc bias
    x = x_ref[0].astype(jnp.float32)                              # [N, F]

    # ---- Conv1d over features (kernel 3, padding 1), all leads at once -----
    x_m1 = jnp.dot(x, s_ref[0], preferred_element_type=jnp.float32)   # x[:, f-1]
    x_p1 = jnp.dot(x, s_ref[1], preferred_element_type=jnp.float32)   # x[:, f+1]
    pooled = (jnp.dot(wt_ref[0], x_m1, preferred_element_type=jnp.float32)
              + jnp.dot(wt_ref[1], x, preferred_element_type=jnp.float32)
              + jnp.dot(wt_ref[2], x_p1, preferred_element_type=jnp.float32)
              + b_ref[...])                                        # [M, F]

    # ---- AdaptiveWeight: Linear(F->1) + sigmoid, as VPU mul + lane reduce ---
    logit = jnp.sum(pooled * fcw_ref[...], axis=-1, keepdims=True) + fcb_ref[0, 0]
    weight = jax.nn.sigmoid(logit)                                  # [M, 1]
    feat_ref[0] = (pooled * weight).astype(feat_ref.dtype)

    # ---- adjacency: blockwise 3x3 ones/9 stride-2 pad-1 conv == Q @ A @ Q^T -
    a = adj_ref[0].astype(jnp.float32)                              # [N, N]
    tmp = jnp.dot(q_ref[...], a, preferred_element_type=jnp.float32)     # [M, N]
    out = lax.dot_general(tmp, q_ref[...],
                          dimension_numbers=(((1,), (1,)), ((), ())),
                          preferred_element_type=jnp.float32)             # [M, M]
    adj_out_ref[0] = out.astype(adj_out_ref.dtype)


def _pool_matrix(per_lead, after_lead, num_leads):
    # Separable 3x3 ones/9 kernel, stride 2, pad 1, applied per lead block:
    # Pblk[o, r] = 1/3  if  2o-1 <= r <= 2o+1  (zero padding -> rows outside drop)
    rows = np.arange(after_lead)[:, None]
    cols = np.arange(per_lead)[None, :]
    pblk = ((cols >= 2 * rows - 1) & (cols <= 2 * rows + 1)).astype(np.float32) / 3.0
    return np.kron(np.eye(num_leads, dtype=np.float32), pblk)   # [L*after, L*per]


def lead_specific_patch_pool(x, adj, params, per_lead, after_lead):
    B, N, F = x.shape
    L = N // per_lead
    M = L * after_lead

    # ---- fold module parameters into per-batch constants --------------------
    w1 = params["conv1d_w"].astype(jnp.float32)            # [after_lead, per_lead, 3]
    eye_l = jnp.eye(L, dtype=jnp.float32)
    wt = jnp.stack([jnp.kron(eye_l, w1[:, :, k]) for k in range(3)])   # [3, M, N]
    b_all = jnp.tile(params["conv1d_b"].astype(jnp.float32), L).reshape(M, 1)
    fcw = params["fc_w"].reshape(1, F).astype(jnp.float32)
    fcb = params["fc_b"].reshape(1, 1).astype(jnp.float32)
    # feature shift matrices: column 0 / column F-1 are all-zero -> conv pad=1
    shifts = jnp.asarray(np.stack([np.eye(F, k=1), np.eye(F, k=-1)]), jnp.float32)
    q = jnp.asarray(_pool_matrix(per_lead, after_lead, L))  # [M, N]

    # TODO(synk): if N grows to real graph sizes, add a K-reduction grid axis
    # over N for the Q @ A @ Q^T product (v7x VMEM is only 64 MiB).
    feat, new_adj = pl.pallas_call(
        _fused_kernel,
        out_shape=(jax.ShapeDtypeStruct((B, M, F), x.dtype),
                   jax.ShapeDtypeStruct((B, M, M), adj.dtype)),
        grid=(B,),
        in_specs=[
            pl.BlockSpec((1, N, F), lambda b: (b, 0, 0)),
            pl.BlockSpec((1, N, N), lambda b: (b, 0, 0)),
            pl.BlockSpec((3, M, N), lambda b: (0, 0, 0)),
            pl.BlockSpec((M, 1), lambda b: (0, 0)),
            pl.BlockSpec((1, F), lambda b: (0, 0)),
            pl.BlockSpec((2, F, F), lambda b: (0, 0, 0)),
            pl.BlockSpec((M, N), lambda b: (0, 0)),
            pl.BlockSpec(memory_space=pltpu.MemorySpace.SMEM),   # fc bias scalar
        ],
        out_specs=(
            pl.BlockSpec((1, M, F), lambda b: (b, 0, 0)),
            pl.BlockSpec((1, M, M), lambda b: (b, 0, 0)),
        ),
        compiler_params=pltpu.CompilerParams(
            dimension_semantics=("parallel",)),
    )(x, adj, wt, b_all, fcw, shifts, q, fcb)

    return feat, new_adj


# ------------------------------ pure-JAX reference ----------------------------
def reference(x, adj, params, per_lead, after_lead):
    B, N, F = x.shape
    L = N // per_lead
    w1, b1 = params["conv1d_w"], params["conv1d_b"]
    fcw, fcb = params["fc_w"], params["fc_b"]
    xl = x.reshape(B, L, per_lead, F)
    xp = jnp.pad(xl, ((0, 0), (0, 0), (0, 0), (1, 1)))
    pooled = sum(jnp.einsum('oi,blif->blof', w1[:, :, k], xp[..., k:k + F])
                 for k in range(3))
    pooled = pooled + b1[None, None, :, None]
    weight = jax.nn.sigmoid(jnp.einsum('blof,f->blo', pooled, fcw[0]) + fcb[0])
    x_out = (pooled * weight[..., None]).reshape(B, L * after_lead, F)
    q = jnp.asarray(_pool_matrix(per_lead, after_lead, L))
    new_adj = jnp.einsum('mi,bij,nj->bmn', q, adj, q)
    return x_out, new_adj


if __name__ == "__main__":
    B, per_lead, after_lead, L, F = 2, 4, 2, 3, 32   # weight_dim == features == 32
    N = L * per_lead                                 # num_nodes = 12

    key = jax.random.PRNGKey(0)
    ks = jax.random.split(key, 6)
    x = jax.random.normal(ks[0], (B, N, F), jnp.float32)
    adj = jax.random.normal(ks[1], (B, N, N), jnp.float32)
    params = {
        "conv1d_w": 0.3 * jax.random.normal(ks[2], (after_lead, per_lead, 3), jnp.float32),
        "conv1d_b": 0.1 * jax.random.normal(ks[3], (after_lead,), jnp.float32),
        "fc_w": 0.2 * jax.random.normal(ks[4], (1, F), jnp.float32),
        "fc_b": 0.1 * jax.random.normal(ks[5], (1,), jnp.float32),
    }

    x_out, new_adj = lead_specific_patch_pool(x, adj, params, per_lead, after_lead)
    jax.block_until_ready((x_out, new_adj))

    x_ref, adj_ref = reference(x, adj, params, per_lead, after_lead)
    assert x_out.shape == (B, L * after_lead, F)
    assert new_adj.shape == (B, L * after_lead, L * after_lead)
    assert jnp.allclose(x_out, x_ref, atol=1e-4, rtol=1e-4)
    assert jnp.allclose(new_adj, adj_ref, atol=1e-4, rtol=1e-4)
    print("KERNEL_OK")
</pallas_src>

<mosaic_0001>
module attributes {stable_mosaic.version = 11 : i64} {
  func.func @_fused_kernel(%arg0: i32, %arg1: memref<1x12x32xf32, #tpu.memory_space<vmem>>, %arg2: memref<1x12x12xf32, #tpu.memory_space<vmem>>, %arg3: memref<3x6x12xf32, #tpu.memory_space<vmem>>, %arg4: memref<6x1xf32, #tpu.memory_space<vmem>>, %arg5: memref<1x32xf32, #tpu.memory_space<vmem>>, %arg6: memref<2x32x32xf32, #tpu.memory_space<vmem>>, %arg7: memref<6x12xf32, #tpu.memory_space<vmem>>, %arg8: memref<1x1xf32, #tpu.memory_space<smem>>, %arg9: memref<1x6x32xf32, #tpu.memory_space<vmem>>, %arg10: memref<1x6x6xf32, #tpu.memory_space<vmem>>) attributes {dimension_semantics = [#tpu.dimension_semantics<parallel>], iteration_bounds = array<i64: 2>, scalar_prefetch = 0 : i64, scratch_operands = 0 : i64, tpu.core_type = #tpu.core_type<tc>, window_params = [{transform_indices = @transform_0, window_bounds = array<i64: 1, 12, 32>}, {transform_indices = @transform_1, window_bounds = array<i64: 1, 12, 12>}, {pipeline_mode = #tpu.pipeline_mode<synchronous>, transform_indices = @transform_2, window_bounds = array<i64: 3, 6, 12>}, {pipeline_mode = #tpu.pipeline_mode<synchronous>, transform_indices = @transform_3, window_bounds = array<i64: 6, 1>}, {pipeline_mode = #tpu.pipeline_mode<synchronous>, transform_indices = @transform_4, window_bounds = array<i64: 1, 32>}, {pipeline_mode = #tpu.pipeline_mode<synchronous>, transform_indices = @transform_5, window_bounds = array<i64: 2, 32, 32>}, {pipeline_mode = #tpu.pipeline_mode<synchronous>, transform_indices = @transform_6, window_bounds = array<i64: 6, 12>}, {transform_indices = @transform_7, window_bounds = array<i64: 1, 1>}, {transform_indices = @transform_8, window_bounds = array<i64: 1, 6, 32>}, {transform_indices = @transform_9, window_bounds = array<i64: 1, 6, 6>}]} {
    %c0 = arith.constant 0 : index
    %c0_0 = arith.constant 0 : index
    %c0_1 = arith.constant 0 : index
    %0 = vector.load %arg1[%c0, %c0_0, %c0_1] : memref<1x12x32xf32, #tpu.memory_space<vmem>>, vector<1x12x32xf32>
    %1 = vector.shape_cast %0 : vector<1x12x32xf32> to vector<12x32xf32>
    %c0_2 = arith.constant 0 : index
    %c0_3 = arith.constant 0 : index
    %c0_4 = arith.constant 0 : index
    %2 = vector.load %arg6[%c0_2, %c0_3, %c0_4] : memref<2x32x32xf32, #tpu.memory_space<vmem>>, vector<1x32x32xf32>
    %3 = vector.shape_cast %2 : vector<1x32x32xf32> to vector<32x32xf32>
    %cst = arith.constant dense<0.000000e+00> : vector<12x32xf32>
    %4 = tpu.matmul %1, %3, %cst {dimension_numbers = #tpu.dot_dimension_numbers<[1], [0], [0], [1], [0, 0, 1, 1], [], []>} : vector<12x32xf32>, vector<32x32xf32>, vector<12x32xf32> -> vector<12x32xf32>
    %c1 = arith.constant 1 : index
    %c0_5 = arith.constant 0 : index
    %c0_6 = arith.constant 0 : index
    %5 = vector.load %arg6[%c1, %c0_5, %c0_6] : memref<2x32x32xf32, #tpu.memory_space<vmem>>, vector<1x32x32xf32>
    %6 = vector.shape_cast %5 : vector<1x32x32xf32> to vector<32x32xf32>
    %cst_7 = arith.constant dense<0.000000e+00> : vector<12x32xf32>
    %7 = tpu.matmul %1, %6, %cst_7 {dimension_numbers = #tpu.dot_dimension_numbers<[1], [0], [0], [1], [0, 0, 1, 1], [], []>} : vector<12x32xf32>, vector<32x32xf32>, vector<12x32xf32> -> vector<12x32xf32>
    %c0_8 = arith.constant 0 : index
    %c0_9 = arith.constant 0 : index
    %c0_10 = arith.constant 0 : index
    %8 = vector.load %arg3[%c0_8, %c0_9, %c0_10] : memref<3x6x12xf32, #tpu.memory_space<vmem>>, vector<1x6x12xf32>
    %9 = vector.shape_cast %8 : vector<1x6x12xf32> to vector<6x12xf32>
    %cst_11 = arith.constant dense<0.000000e+00> : vector<6x32xf32>
    %10 = tpu.matmul %9, %4, %cst_11 {dimension_numbers = #tpu.dot_dimension_numbers<[1], [0], [0], [1], [0, 0, 1, 1], [], []>} : vector<6x12xf32>, vector<12x32xf32>, vector<6x32xf32> -> vector<6x32xf32>
    %c1_12 = arith.constant 1 : index
    %c0_13 = arith.constant 0 : index
    %c0_14 = arith.constant 0 : index
    %11 = vector.load %arg3[%c1_12, %c0_13, %c0_14] : memref<3x6x12xf32, #tpu.memory_space<vmem>>, vector<1x6x12xf32>
    %12 = vector.shape_cast %11 : vector<1x6x12xf32> to vector<6x12xf32>
    %cst_15 = arith.constant dense<0.000000e+00> : vector<6x32xf32>
    %13 = tpu.matmul %12, %1, %cst_15 {dimension_numbers = #tpu.dot_dimension_numbers<[1], [0], [0], [1], [0, 0, 1, 1], [], []>} : vector<6x12xf32>, vector<12x32xf32>, vector<6x32xf32> -> vector<6x32xf32>
    %14 = arith.addf %10, %13 : vector<6x32xf32>
    %c2 = arith.constant 2 : index
    %c0_16 = arith.constant 0 : index
    %c0_17 = arith.constant 0 : index
    %15 = vector.load %arg3[%c2, %c0_16, %c0_17] : memref<3x6x12xf32, #tpu.memory_space<vmem>>, vector<1x6x12xf32>
    %16 = vector.shape_cast %15 : vector<1x6x12xf32> to vector<6x12xf32>
    %cst_18 = arith.constant dense<0.000000e+00> : vector<6x32xf32>
    %17 = tpu.matmul %16, %7, %cst_18 {dimension_numbers = #tpu.dot_dimension_numbers<[1], [0], [0], [1], [0, 0, 1, 1], [], []>} : vector<6x12xf32>, vector<12x32xf32>, vector<6x32xf32> -> vector<6x32xf32>
    %18 = arith.addf %14, %17 : vector<6x32xf32>
    %c0_19 = arith.constant 0 : index
    %c0_20 = arith.constant 0 : index
    %19 = vector.load %arg4[%c0_19, %c0_20] : memref<6x1xf32, #tpu.memory_space<vmem>>, vector<6x1xf32>
    %20 = vector.broadcast %19 : vector<6x1xf32> to vector<6x32xf32>
    %21 = arith.addf %18, %20 : vector<6x32xf32>
    %c0_21 = arith.constant 0 : index
    %c0_22 = arith.constant 0 : index
    %22 = vector.load %arg5[%c0_21, %c0_22] : memref<1x32xf32, #tpu.memory_space<vmem>>, vector<1x32xf32>
    %23 = vector.broadcast %22 : vector<1x32xf32> to vector<6x32xf32>
    %24 = arith.mulf %21, %23 : vector<6x32xf32>
    %cst_23 = arith.constant dense<0.000000e+00> : vector<6xf32>
    %25 = vector.multi_reduction <add>, %24, %cst_23 [1] : vector<6x32xf32> to vector<6xf32>
    %26 = vector.shape_cast %25 : vector<6xf32> to vector<6x1xf32>
    %c0_24 = arith.constant 0 : index
    %c0_25 = arith.constant 0 : index
    %27 = memref.load %arg8[%c0_24, %c0_25] : memref<1x1xf32, #tpu.memory_space<smem>>
    %28 = vector.broadcast %27 : f32 to vector<6x1xf32>
    %29 = arith.addf %26, %28 : vector<6x1xf32>
    %30 = arith.negf %29 : vector<6x1xf32>
    %31 = math.exp %30 : vector<6x1xf32>
    %cst_26 = arith.constant 1.000000e+00 : f32
    %32 = vector.broadcast %cst_26 : f32 to vector<6x1xf32>
    %33 = arith.addf %32, %31 : vector<6x1xf32>
    %34 = arith.divf %32, %33 : vector<6x1xf32>
    %35 = vector.broadcast %34 : vector<6x1xf32> to vector<6x32xf32>
    %36 = arith.mulf %21, %35 : vector<6x32xf32>
    %c0_27 = arith.constant 0 : index
    %c0_28 = arith.constant 0 : index
    %c0_29 = arith.constant 0 : index
    %37 = vector.load %arg9[%c0_27, %c0_28, %c0_29] : memref<1x6x32xf32, #tpu.memory_space<vmem>>, vector<1x6x32xf32>
    %38 = vector.shape_cast %37 : vector<1x6x32xf32> to vector<6x32xf32>
    %39 = vector.shape_cast %36 : vector<6x32xf32> to vector<1x6x32xf32>
    tpu.vector_store %arg9[%c0_27, %c0_28, %c0_29], %39 {strides = array<i32>} : memref<1x6x32xf32, #tpu.memory_space<vmem>>, vector<1x6x32xf32>,
    %c0_30 = arith.constant 0 : index
    %c0_31 = arith.constant 0 : index
    %c0_32 = arith.constant 0 : index
    %40 = vector.load %arg2[%c0_30, %c0_31, %c0_32] : memref<1x12x12xf32, #tpu.memory_space<vmem>>, vector<1x12x12xf32>
    %41 = vector.shape_cast %40 : vector<1x12x12xf32> to vector<12x12xf32>
    %c0_33 = arith.constant 0 : index
    %c0_34 = arith.constant 0 : index
    %42 = vector.load %arg7[%c0_33, %c0_34] : memref<6x12xf32, #tpu.memory_space<vmem>>, vector<6x12xf32>
    %cst_35 = arith.constant dense<0.000000e+00> : vector<6x12xf32>
    %43 = tpu.matmul %42, %41, %cst_35 {dimension_numbers = #tpu.dot_dimension_numbers<[1], [0], [0], [1], [0, 0, 1, 1], [], []>} : vector<6x12xf32>, vector<12x12xf32>, vector<6x12xf32> -> vector<6x12xf32>
    %c0_36 = arith.constant 0 : index
    %c0_37 = arith.constant 0 : index
    %44 = vector.load %arg7[%c0_36, %c0_37] : memref<6x12xf32, #tpu.memory_space<vmem>>, vector<6x12xf32>
    %cst_38 = arith.constant dense<0.000000e+00> : vector<6x6xf32>
    %45 = tpu.matmul %43, %44, %cst_38 {dimension_numbers = #tpu.dot_dimension_numbers<[1], [1], [0], [0], [0, 0, 1, 0], [], []>} : vector<6x12xf32>, vector<6x12xf32>, vector<6x6xf32> -> vector<6x6xf32>
    %c0_39 = arith.constant 0 : index
    %c0_40 = arith.constant 0 : index
    %c0_41 = arith.constant 0 : index
    %46 = vector.load %arg10[%c0_39, %c0_40, %c0_41] : memref<1x6x6xf32, #tpu.memory_space<vmem>>, vector<1x6x6xf32>
    %47 = vector.shape_cast %46 : vector<1x6x6xf32> to vector<6x6xf32>
    %48 = vector.shape_cast %45 : vector<6x6xf32> to vector<1x6x6xf32>
    tpu.vector_store %arg10[%c0_39, %c0_40, %c0_41], %48 {strides = array<i32>} : memref<1x6x6xf32, #tpu.memory_space<vmem>>, vector<1x6x6xf32>,
    return
  }
  func.func @transform_0(%arg0: i32) -> (i32, i32, i32) {
    %c0_i32 = arith.constant 0 : i32
    %c0_i32_0 = arith.constant 0 : i32
    %c0_i32_1 = arith.constant 0 : i32
    return %arg0, %c0_i32, %c0_i32_0 : i32, i32, i32
  }
  func.func @transform_1(%arg0: i32) -> (i32, i32, i32) {
    %c0_i32 = arith.constant 0 : i32
    %c0_i32_0 = arith.constant 0 : i32
    %c0_i32_1 = arith.constant 0 : i32
    return %arg0, %c0_i32, %c0_i32_0 : i32, i32, i32
  }
  func.func @transform_2(%arg0: i32) -> (i32, i32, i32) {
    %c0_i32 = arith.constant 0 : i32
    %c0_i32_0 = arith.constant 0 : i32
    %c0_i32_1 = arith.constant 0 : i32
    %c0_i32_2 = arith.constant 0 : i32
    return %c0_i32, %c0_i32_0, %c0_i32_1 : i32, i32, i32
  }
  func.func @transform_3(%arg0: i32) -> (i32, i32) {
    %c0_i32 = arith.constant 0 : i32
    %c0_i32_0 = arith.constant 0 : i32
    %c0_i32_1 = arith.constant 0 : i32
    return %c0_i32, %c0_i32_0 : i32, i32
  }
  func.func @transform_4(%arg0: i32) -> (i32, i32) {
    %c0_i32 = arith.constant 0 : i32
    %c0_i32_0 = arith.constant 0 : i32
    %c0_i32_1 = arith.constant 0 : i32
    return %c0_i32, %c0_i32_0 : i32, i32
  }
  func.func @transform_5(%arg0: i32) -> (i32, i32, i32) {
    %c0_i32 = arith.constant 0 : i32
    %c0_i32_0 = arith.constant 0 : i32
    %c0_i32_1 = arith.constant 0 : i32
    %c0_i32_2 = arith.constant 0 : i32
    return %c0_i32, %c0_i32_0, %c0_i32_1 : i32, i32, i32
  }
  func.func @transform_6(%arg0: i32) -> (i32, i32) {
    %c0_i32 = arith.constant 0 : i32
    %c0_i32_0 = arith.constant 0 : i32
    %c0_i32_1 = arith.constant 0 : i32
    return %c0_i32, %c0_i32_0 : i32, i32
  }
  func.func @transform_7(%arg0: i32) -> (i32, i32) {
    %c0_i32 = arith.constant 0 : i32
    %c0_i32_0 = arith.constant 0 : i32
    %c0_i32_1 = arith.constant 0 : i32
    return %c0_i32, %c0_i32_0 : i32, i32
  }
  func.func @transform_8(%arg0: i32) -> (i32, i32, i32) {
    %c0_i32 = arith.constant 0 : i32
    %c0_i32_0 = arith.constant 0 : i32
    %c0_i32_1 = arith.constant 0 : i32
    return %arg0, %c0_i32, %c0_i32_0 : i32, i32, i32
  }
  func.func @transform_9(%arg0: i32) -> (i32, i32, i32) {
    %c0_i32 = arith.constant 0 : i32
    %c0_i32_0 = arith.constant 0 : i32
    %c0_i32_1 = arith.constant 0 : i32
    return %arg0, %c0_i32, %c0_i32_0 : i32, i32, i32
  }
}

</mosaic_0001>

<bundles_post_ra>
// kernel: tpu_custom_call.1
= control target key start
LH: loop header
LB: loop body
LE: loop exit
PB: predicated region body
PF: predicated region fallthrough
CT: control target
= control target key end

     0   :  { %s1280_s11 = smov 0   ;;  %s1378_s0 = inlined_call_operand.vmem [shape: f32[2,12,32], index: 0, kind: input, shape index: {}]   ;;  %s1379_s1 = inlined_call_operand.vmem [shape: f32[2,12,12], index: 1, kind: input, shape index: {}]   ;;  %s1380_s2 = inlined_call_operand.vmem [shape: f32[3,6,12], index: 2, kind: input, shape index: {}]   ;;  %s1381_s3 = inlined_call_operand.vmem [shape: f32[6,1], index: 3, kind: input, shape index: {}]   ;;  %s1382_s4 = inlined_call_operand.vmem [shape: f32[1,32], index: 4, kind: input, shape index: {}]   ;;  %s1383_s5 = inlined_call_operand.vmem [shape: f32[2,32,32], index: 5, kind: input, shape index: {}]   ;;  %s1384_s6 = inlined_call_operand.vmem [shape: f32[6,12], index: 6, kind: input, shape index: {}]   ;;  %s1385_s7 = inlined_call_operand.<no memory space> [shape: f32[1,1], index: 7, kind: input, shape index: {}]   ;;  %s1386_s8 = inlined_call_operand.vmem [shape: f32[2,6,32], index: 8, kind: output, shape index: {0}]   ;;  %s1387_s9 = inlined_call_operand.vmem [shape: f32[2,6,6], index: 9, kind: output, shape index: {1}]  }
   0x1   :  { %15 = sst [smem:[#allocation2]] %s1385_s7 }
   0x2 LB: > { %s1046_s12 = sadd.s32 4294967295, %s1220_s11   ;;  %p1050_p0 = scmp.ge.s32.totalorder %s1220_s11, 1  ;;  %s1220_s11 = sphi %s1280_s11, %s21_s11  }
   0x3   : > { %p301_p1 = scmp.lt.s32.totalorder %s1220_s11, 3 }
   0x5   : > { %p302_p2 = pnand %p1050_p0, %p301_p1 }
   0x6   : > { %v365_v0 = vld [vmem:[%s1383_s5] sm:$0xff] (!%p302_p2)  ;;  %v366_v1 = vld [vmem:[%s1383_s5 + $0x8] sm:$0xff] (!%p302_p2)  ;;  %p345_p3 = scmp.lt.s32.totalorder (!%p302_p2), %s1046_s12, 1  ;;  %v367_v5 = vld [vmem:[%s1383_s5 + $0x10] sm:$0xff] (!%p302_p2)  ;;  %vm369_vm0 = vcmask (!%p302_p2), 261120   ;;  %vm538_vm1 = vcmask (!%p302_p2), 1043456  }
   0x7   : > { %305 = sbr.rel (%p302_p2) target bundleno = 666 (0x29a), region = 52  ;;  %v1059_v2 = vld [vmem:[%s1383_s5 + $0x20] sm:$0xff] (!%p302_p2)  ;;  %v1164_v3 = vpack.c.bf16 (!%p302_p2), %v366_v1, %v365_v0  ;;  %v1060_v4 = vld [vmem:[%s1383_s5 + $0x28] sm:$0xff] (!%p302_p2)  ;;  %v368_v6 = vld [vmem:[%s1383_s5 + $0x18] sm:$0xff] (!%p302_p2)  ;;  %v1222_v15 = vmov (!%p302_p2), 0.0|0.0   ;;  %vm1223_vm2 = vmmov (!%p302_p2), 1  }
   0x8   : > { %v1172_v7 = vpack.c.bf16 (!%p302_p2), %v1060_v4, %v1059_v2  ;;  %v1168_v8 = vpack.c.bf16 (!%p302_p2), %v368_v6, %v367_v5  ;;  %v1061_v9 = vld [vmem:[%s1383_s5 + $0x30] sm:$0xff] (!%p302_p2)  ;;  %v1062_v10 = vld [vmem:[%s1383_s5 + $0x38] sm:$0xff] (!%p302_p2)  ;;  %vm1320_vm3 = vmpackc.low (!%p302_p2), %vm538_vm1, %vm1223_vm2  ;;  %vm1224_vm4 = vmmov (!%p302_p2), 0   ;;  %v1225_v17 = vmov (!%p302_p2), 0.0   ;;  %s785_s27 = sld [smem:[#allocation2]] (!%p302_p2) }
   0x9   : > { %1165 = vmatprep.subr.bf16.mxu0 (!%p302_p2), %v1164_v3  ;;  %v1176_v11 = vpack.c.bf16 (!%p302_p2), %v1062_v10, %v1061_v9  ;;  %v1065_v18 = vld [vmem:[%s1380_s2 + $0x8] sm:$0x3f] (!%p302_p2)  ;;  %vm534_vm5 = vcmask (!%p302_p2), 97280   ;;  %v766_v19 = vld [vmem:[%s1381_s3] sm:$0x3f] (!%p302_p2)  ;;  %v1226_v20 = vmov (!%p302_p2), 0  }
   0xa   : > { %1167 = vmatpush3.bf16.msra.mxu0 (!%p302_p2), %v1164_v3  ;;  %1173 = vmatprep.subr.bf16.mxu1 (!%p302_p2), %v1172_v7  ;;  %v531_v30 = vld [vmem:[%s1380_s2] sm:$0x3f] (!%p302_p2)  ;;  %v1070_v31 = vld [vmem:[%s1380_s2 + $0x10] sm:$0x3f] (!%p302_p2)  ;;  %vm781_vm6 = vcmask (!%p302_p2), 259072   ;;  %vm948_vm7 = vcmask (!%p302_p2), 46080  }
   0xb   : > { %1175 = vmatpush3.bf16.msra.mxu1 (!%p302_p2), %v1172_v7  ;;  %1169 = vmatprep.subr.bf16.mxu0 (!%p302_p2), %v1168_v8  ;;  %v798_v32 = vld [vmem:[%s1384_s6] sm:$0x3f] (!%p302_p2) }
   0xc   : > { %1177 = vmatprep.subr.bf16.mxu1 (!%p302_p2), %v1176_v11  ;;  %1209 = vset.pattern.permute.xlu0 (!%p302_p2), %v1226_v20  ;;  %v1073_v43 = vld [vmem:[%s1382_s4] ss:$0 sm:$0xff] (!%p302_p2) }
   0xd   : > { %769 = vperm.xlu0 (!%p302_p2), %1209, %v766_v19  }
   0xe   : > { %s1391_s12 = smov (!%p345_p3, %s1046_s12), 1  ;;  %1171 = vmatpush3.bf16.msra.mxu0 %v1168_v8  ;;  %v786_v48 = vstv %s785_s27 }
   0xf   : > { %s1081_s28 = sshll.u32 %s1391_s12, 4  ;;  %1179 = vmatpush3.bf16.msra.mxu1 %v1176_v11  ;;  %1180 = vmatprep.subr.bf16.mxu0 %v1222_v15 }
  0x10   : > { %s349_s10 = scalar_lea.vmem %s1378_s0, %s1081_s28  ;;  %1184 = vmatprep.subr.bf16.mxu1 %v1222_v15  ;;  %s354_s18 = scalar_lea.vmem %s1379_s1, %s1081_s28 }
  0x11   : > { %v363_v12 = vld [vmem:[%s349_s10] sm:$0xff]  ;;  %v364_v13 = vld [vmem:[%s349_s10 + $0x8] sm:$0xf]  ;;  %s1055_s28 = sshll.u32 %s1391_s12, 3 }
  0x12   : > { %1117 = vmatprep.mubr.msk.f32.mxu0 %vm369_vm0, %v363_v12  ;;  %1128 = vmatprep.mubr.msk.f32.mxu1 %vm369_vm0, %v363_v12  ;;  %v1181_v14 = vpack.c.bf16 %v364_v13, %v363_v12  ;;  %v796_v22 = vld [vmem:[%s354_s18] sm:$0xff]  ;;  %v797_v23 = vld [vmem:[%s354_s18 + $0x8] sm:$0xf]  ;;  %s358_s10 = scalar_lea.vmem %s1386_s8, %s1055_s28  ;;  %s362_s7 = scalar_lea.vmem %s1387_s9, %s1055_s28 }
  0x13   : > { %1118 = vmatmul.mubr.msk.f32.vlgmr.msra.gmra.mrb[0].mxu0 %vm369_vm0, %v364_v13  ;;  %1129 = vmatmul.mubr.msk.f32.vlgmr.msra.gmra.mrb[0].mxu1 %vm369_vm0, %v364_v13  ;;  %v1193_v29 = vpack.c.bf16 %v797_v23, %v796_v22 }
  0x14   : > { %1183 = vmatpush3.bf16.msk.msra.mxu0 %vm1320_vm3, %v1181_v14  ;;  %1135 = vmatprep.mubr.msk.f32.mxu0 %vm1224_vm4, %v1225_v17 }
  0x15   : > { %1188 = vmatprep.subr.bf16.mxu0 %v1222_v15  ;;  %1142 = vmatprep.mubr.msk.f32.mxu1 %vm1224_vm4, %v1225_v17 }
  0x17   : > { %1136 = vmatmul.mubr.msk.f32.vlgmr.msra.gmra.mrb[2].mxu0 %vm534_vm5, %v1065_v18 }
  0x18   : > { %1149 = vmatprep.mubr.msk.f32.mxu0 %vm1224_vm4, %v1225_v17 }
  0x8c   : > { %v770_v39 = vpop.permute.xlu0 %769 }
  0xe6   : > { %v1119_v21 = vpop.f32.mrb[0].mxu0  ;;  %v1130_v25 = vpop.f32.mrb[0].mxu1 }
  0xe7   : > { %v442_v24 = vpop.f32.mrb[1].mxu0  ;;  %v522_v27 = vpop.f32.mrb[1].mxu1 }
  0xe8   : > { %v1185_v26 = vpack.c.bf16 %v1119_v21, %v442_v24  ;;  %v1189_v28 = vpack.c.bf16 %v1130_v25, %v522_v27 }
  0xea   : > { %1187 = vmatpush3.bf16.msk.msra.mxu1 %vm1320_vm3, %v1185_v26  ;;  %1191 = vmatpush3.bf16.msk.msra.mxu0 %vm1320_vm3, %v1189_v28  ;;  %v607_v33 = vpop.f32.mrb[2].mxu0 }
  0xeb   : > { %1192 = vmatprep.subr.bf16.mxu1 %v1222_v15  ;;  %1159 = vmatprep.subr.mxu0 %v1225_v17  ;;  %v1137_v34 = vpop.f32.mrb[3].mxu0 }
  0xed   : > { %1143 = vmatmul.mubr.msk.f32.vlgmr.msra.gmra.mrb[2].mxu1 %vm534_vm5, %v531_v30  ;;  %1150 = vmatmul.mubr.msk.f32.vlgmr.msra.gmra.mrb[4].mxu0 %vm534_vm5, %v1070_v31 }
  0xee   : > { %1195 = vmatpush3.bf16.msk.msra.mxu1 %vm1320_vm3, %v1193_v29  ;;  %1156 = vmatprep.mubr.msk.f32.mxu1 %vm1224_vm4, %v1225_v17 }
  0xef   : > { %1161 = vmatprep.mubr.msk.f32.mxu0 %vm1224_vm4, %v1225_v17 }
  0xf1   : > { %1157 = vmatmul.mubr.msk.f32.vlgmr.msra.gmra.mrb[4].mxu1 %vm534_vm5, %v798_v32 }
  0xf3   : > { %1160 = vmatpush3.xpose.msk.msra.mxu0 %vm534_vm5, %v798_v32 }
 0x1c0   : > { %v683_v35 = vpop.f32.mrb[2].mxu1  ;;  %v761_v38 = vpop.f32.mrb[4].mxu0 }
 0x1c1   : > { %v684_v36 = vadd.f32 %v683_v35, %v607_v33  ;;  %v1144_v37 = vpop.f32.mrb[3].mxu1  ;;  %v1151_v40 = vpop.f32.mrb[5].mxu0 }
 0x1c3   : > { %v765_v41 = vadd.f32 %v761_v38, %v684_v36 }
 0x1c4   : > { %v871_v42 = vpop.f32.mrb[4].mxu1 }
 0x1c5   : > { %v772_v44 = vadd.f32 %v770_v39, %v765_v41  ;;  %v1158_v45 = vpop.f32.mrb[5].mxu1  ;;  %1162 = vmatmul.mubr.msk.f32.vlgmr.msra.gmra.mrb[6].mxu0 %vm534_vm5, %v871_v42 }
 0x1c7   : > { %v780_v46 = vmul.f32 %v1073_v43, %v772_v44 }
 0x1c9   : > { %v782_v47 = vsel %vm781_vm6, %v780_v46, 0.0 }
 0x1ca   : > { %783 = vadd.xlane.f32.xlu0 %v782_v47 }
 0x257   : > { %v784_v49 = vpop.xlane.xlu0 %783 }
 0x258   : > { %v787_v50 = vadd.f32 %v786_v48, %v784_v49 }
 0x25a   : > { %v1074_v51 = vmul.f32 -1.442695, %v787_v50 }
 0x25c   : > { %1210 = vpow2.f32 %v1074_v51 }
 0x266   : > { %v1211_v52 = vpop.eup %1210 }
 0x267   : > { %v791_v53 = vadd.f32 1.0, %v1211_v52 }
 0x269   : > { %1212 = vrcp.f32 %v791_v53 }
 0x273   : > { %v1213_v54 = vpop.eup %1212 }
 0x274   : > { %v794_v55 = vmul.f32 %v1213_v54, %v772_v44 }
 0x276   : > { %795 = vst.msk [vmem:[%s358_s10] sm:$0x3f] %vm781_vm6, %v794_v55 }
 0x298   : > { %v944_v56 = vpop.f32.mrb[6].mxu0 }
 0x299   : > { %949 = vst.msk [vmem:[%s362_s7] sm:$0x3f] %vm948_vm7, %v944_v56  ;;  %v1163_v57 = vpop.f32.mrb[7].mxu0 }
 0x29a PF: > { %s21_s11 = sadd.s32 1, %s1220_s11  }
 0x29b   : > { %p18_p4 = scmp.ge.s32.totalorder %s21_s11, 4  }
 0x29d   :  { %20 = sbr.rel (!%p18_p4) target bundleno = 2 (0x2), region = 100 }

</bundles_post_ra>
